<compile_context>
chip_gen: v5e
topology: v5e:2x2
jax: 0.10.0
libtpu: 0.0.40
codegen_flags: <defaults>
</compile_context>

<pallas_src>
import functools
import math

import jax
import jax.numpy as jnp
from jax.experimental import pallas as pl
from jax.experimental.pallas import tpu as pltpu


def _round_up(x, m):
    return ((x + m - 1) // m) * m


def _sublane_min(dtype):
    # Minimum sublane tile for packed dtypes: f32 -> 8, bf16 -> 16, i8/fp8 -> 32.
    return {4: 8, 2: 16, 1: 32}.get(jnp.dtype(dtype).itemsize, 8)


def conv1d_kernel(x_ref, w_ref, b_ref, o_ref, *, compute_dtype):
    x = x_ref[...].astype(compute_dtype)          # (tm, nx)  per-block cast (cheap)
    w = w_ref[...].astype(compute_dtype)          # (nx, tn)  no-op when W stored as compute_dtype
    acc = jnp.dot(x, w, preferred_element_type=jnp.float32)   # (tm, tn) f32 accum on MXU
    acc = acc + b_ref[...].astype(jnp.float32)                 # broadcast bias row
    o_ref[...] = acc.astype(o_ref.dtype)


def conv1d_forward(x, weight, bias, *, tm=256, tn=512, mxu_dtype=None):
    """Conv1D forward: y = x @ weight + bias over the last dim of x."""
    *lead, nx = x.shape
    nx_w, nf = weight.shape
    assert nx == nx_w and bias.shape == (nf,)

    M = math.prod(lead) if lead else 1
    x2 = x.reshape(M, nx)          # metadata-only reshape
    b2 = bias.reshape(1, nf)

    x_item = jnp.dtype(x.dtype).itemsize
    w_item = jnp.dtype(weight.dtype).itemsize
    b_item = jnp.dtype(bias.dtype).itemsize
    o_item = x_item                # output keeps x.dtype (like torch.addmm)

    # MXU operand dtype: explicit override, else the narrower persistent storage
    # dtype (so bf16-stored weights automatically take the fast bf16 MXU path).
    if mxu_dtype is not None:
        compute_dtype = jnp.dtype(mxu_dtype)
    else:
        compute_dtype = jnp.dtype(weight.dtype) if w_item < x_item else jnp.dtype(x.dtype)
    # TODO(synk): per-generation low-precision weight paths (int8/int4 on
    # v5e/v6e, fp8 on v7x) with per-channel scales folded into the epilogue.

    # Tile sizes: rows aligned to the sublane minimum, cols to 128 lanes.
    sub = _sublane_min(x.dtype)
    tm = max(sub, _round_up(min(tm, _round_up(M, sub)), sub))
    tn = max(128, _round_up(min(tn, _round_up(nf, 128)), 128))

    # Per-generation VMEM budget: ~3/4 of capacity leaves headroom for Mosaic
    # internal scratch, DMA descriptors and semaphores.
    try:
        info = pltpu.get_tpu_info()
        vmem_cap = int(getattr(info, "vmem_capacity_bytes", 64 * 2**20))
    except Exception:
        vmem_cap = 64 * 2**20
    usable = (vmem_cap * 3) // 4

    def footprint(tm_, tn_):
        # Double-buffered input/output blocks resident in VMEM.
        return 2 * (tm_ * nx * x_item + nx * tn_ * w_item
                    + tn_ * b_item + tm_ * tn_ * o_item)

    # Shrink tiles if the double-buffered footprint would exceed the budget.
    while footprint(tm, tn) > usable and tn > 128:
        tn = max(128, _round_up(tn // 2, 128))
    while footprint(tm, tn) > usable and tm > sub:
        tm = max(sub, _round_up(tm // 2, sub))
    # TODO(synk): K-tiled accumulator path (grid axis over nx, f32 VMEM scratch,
    # "arbitrary" semantics) for very large nx that cannot hold full-K blocks in
    # v7x's 64 MiB VMEM; GPT-2-sized nx (768-1600) never needs it.

    n_tiles = pl.cdiv(nf, tn)
    m_tiles = pl.cdiv(M, tm)

    vmem_limit = int(min(usable, max(32 * 2**20, footprint(tm, tn) + (4 << 20))))

    cost = pl.CostEstimate(
        flops=2 * M * nx * nf,
        transcendentals=0,
        # x is re-read once per N tile (N is the outer grid axis).
        bytes_accessed=(M * nx * x_item * n_tiles + nx * nf * w_item
                        + nf * b_item + M * nf * o_item),
    )

    kernel = functools.partial(conv1d_kernel, compute_dtype=compute_dtype)
    out = pl.pallas_call(
        kernel,
        out_shape=jax.ShapeDtypeStruct((M, nf), x.dtype),
        # N outer -> (nx, tn) weight slab reused across the inner M loop.
        # Only the M axis is megacore-"parallel" (balanced v7x 2-TC split).
        grid=(n_tiles, m_tiles),
        in_specs=[
            pl.BlockSpec((tm, nx), lambda n, m: (m, 0)),   # x rows, full K per block
            pl.BlockSpec((nx, tn), lambda n, m: (0, n)),   # weight column slab
            pl.BlockSpec((1, tn), lambda n, m: (0, n)),    # bias column slab
        ],
        out_specs=pl.BlockSpec((tm, tn), lambda n, m: (m, n)),
        compiler_params=pltpu.CompilerParams(
            dimension_semantics=("arbitrary", "parallel"),
            vmem_limit_bytes=vmem_limit,
        ),
        cost_estimate=cost,
    )(x2, weight, b2)

    return out.reshape(*lead, nf)


if __name__ == "__main__":
    # Small shapes consistent with the module: batch=2, seq=8, nx=32, nf=3*nx
    # (a tiny GPT-2 c_attn-style projection).
    B, S, NX = 2, 8, 32
    NF = 3 * NX

    key = jax.random.PRNGKey(0)
    kx, kw, kb = jax.random.split(key, 3)

    x = jax.random.normal(kx, (B, S, NX), dtype=jnp.float32)
    # Conv1D init: weight ~ N(0, 0.02); nonzero bias to exercise the bias add.
    weight_f32 = 0.02 * jax.random.normal(kw, (NX, NF), dtype=jnp.float32)
    bias = 0.1 * jax.random.normal(kb, (NF,), dtype=jnp.float32)

    ref = x @ weight_f32 + bias

    # Exact f32 path (f32-stored weights, f32 MXU operands).
    out_f32 = jax.block_until_ready(conv1d_forward(x, weight_f32, bias))
    assert out_f32.shape == (B, S, NF)
    assert jnp.allclose(out_f32, ref, atol=1e-5, rtol=1e-5), "f32 mismatch vs reference"

    # Recommended inference path: weights stored bf16 in HBM (persistent storage
    # dtype, NOT a per-call wrapper cast); x cast per block; f32 accumulation.
    weight_bf16 = weight_f32.astype(jnp.bfloat16)
    out_bf16 = jax.block_until_ready(conv1d_forward(x, weight_bf16, bias))
    assert jnp.allclose(out_bf16, ref, atol=5e-2, rtol=5e-2), "bf16 mismatch vs reference"

    print("KERNEL_OK")
</pallas_src>

<mosaic_0001>
module attributes {stable_mosaic.version = 11 : i64} {
  func.func @conv1d_kernel(%arg0: i32, %arg1: i32, %arg2: memref<16x32xf32, #tpu.memory_space<vmem>>, %arg3: memref<32x128xf32, #tpu.memory_space<vmem>>, %arg4: memref<1x128xf32, #tpu.memory_space<vmem>>, %arg5: memref<16x128xf32, #tpu.memory_space<vmem>>) attributes {dimension_semantics = [#tpu.dimension_semantics<arbitrary>, #tpu.dimension_semantics<parallel>], iteration_bounds = array<i64: 1, 1>, scalar_prefetch = 0 : i64, scratch_operands = 0 : i64, tpu.core_type = #tpu.core_type<tc>, window_params = [{transform_indices = @transform_0, window_bounds = array<i64: 16, 32>}, {transform_indices = @transform_1, window_bounds = array<i64: 32, 128>}, {transform_indices = @transform_2, window_bounds = array<i64: 1, 128>}, {transform_indices = @transform_3, window_bounds = array<i64: 16, 128>}]} {
    %c0 = arith.constant 0 : index
    %c0_0 = arith.constant 0 : index
    %0 = vector.load %arg2[%c0, %c0_0] : memref<16x32xf32, #tpu.memory_space<vmem>>, vector<16x32xf32>
    %c0_1 = arith.constant 0 : index
    %c0_2 = arith.constant 0 : index
    %1 = vector.load %arg3[%c0_1, %c0_2] : memref<32x128xf32, #tpu.memory_space<vmem>>, vector<32x128xf32>
    %cst = arith.constant dense<0.000000e+00> : vector<16x128xf32>
    %2 = tpu.matmul %0, %1, %cst {dimension_numbers = #tpu.dot_dimension_numbers<[1], [0], [0], [1], [0, 0, 1, 1], [], []>} : vector<16x32xf32>, vector<32x128xf32>, vector<16x128xf32> -> vector<16x128xf32>
    %c0_3 = arith.constant 0 : index
    %c0_4 = arith.constant 0 : index
    %3 = vector.load %arg4[%c0_3, %c0_4] : memref<1x128xf32, #tpu.memory_space<vmem>>, vector<1x128xf32>
    %4 = vector.broadcast %3 : vector<1x128xf32> to vector<16x128xf32>
    %5 = arith.addf %2, %4 : vector<16x128xf32>
    %c0_5 = arith.constant 0 : index
    %c0_6 = arith.constant 0 : index
    %6 = vector.load %arg5[%c0_5, %c0_6] : memref<16x128xf32, #tpu.memory_space<vmem>>, vector<16x128xf32>
    tpu.vector_store %arg5[%c0_5, %c0_6], %5 {strides = array<i32>} : memref<16x128xf32, #tpu.memory_space<vmem>>, vector<16x128xf32>,
    return
  }
  func.func @transform_0(%arg0: i32, %arg1: i32) -> (i32, i32) {
    %c0_i32 = arith.constant 0 : i32
    %c0_i32_0 = arith.constant 0 : i32
    return %arg1, %c0_i32 : i32, i32
  }
  func.func @transform_1(%arg0: i32, %arg1: i32) -> (i32, i32) {
    %c0_i32 = arith.constant 0 : i32
    %c0_i32_0 = arith.constant 0 : i32
    return %c0_i32, %arg0 : i32, i32
  }
  func.func @transform_2(%arg0: i32, %arg1: i32) -> (i32, i32) {
    %c0_i32 = arith.constant 0 : i32
    %c0_i32_0 = arith.constant 0 : i32
    return %c0_i32, %arg0 : i32, i32
  }
  func.func @transform_3(%arg0: i32, %arg1: i32) -> (i32, i32) {
    %c0_i32 = arith.constant 0 : i32
    return %arg1, %arg0 : i32, i32
  }
}

</mosaic_0001>

<bundles_post_ra>
// kernel: tpu_custom_call.1
= control target key start
LH: loop header
LB: loop body
LE: loop exit
PB: predicated region body
PF: predicated region fallthrough
CT: control target
= control target key end

     0   :  { %8 = vsyncpa [#allocation3], 0  ;;  %s245_s0 = inlined_call_operand.hbm [shape: f32[16,32], index: 0, kind: input, shape index: {}]   ;;  %s246_s1 = inlined_call_operand.hbm [shape: f32[32,96], index: 1, kind: input, shape index: {}]   ;;  %s247_s2 = inlined_call_operand.vmem [shape: f32[1,96], index: 2, kind: input, shape index: {}]   ;;  %s248_s3 = inlined_call_operand.hbm [shape: f32[16,96], index: 3, kind: output, shape index: {}]  }
   0x1   :  { %9 = vsyncpa [#allocation6], 0 }
   0x2   :  { %10 = vsyncpa [#allocation4], 0  ;;  %s15_s14 = sshll.u32 %s245_s0, 4  ;;  %s199_s15 = smov [#allocation2]   ;;  %s16_s14 = int_to_ptr.hbm [resolvable:$true] %s15_s14 }
   0x3   :  { %s17_s16 = sshll.u32 %s199_s15, 4  ;;  %s28_s19 = sshll.u32 %s246_s1, 4  ;;  %s18_s16 = int_to_ptr.vmem [resolvable:$true] %s17_s16  ;;  %s29_s19 = int_to_ptr.hbm [resolvable:$true] %s28_s19 }
   0x4   :  { %s200_s20 = smov 128   ;;  %s201_s21 = smov 8  }
   0x5   :  { %23 = dma.hbm_to_vmem [thread:$0]  %s16_s14, 256, %s18_s16, [#allocation3], %s200_s20, %s200_s20, %s201_s21  }
   0x6   :  { %s202_s22 = smov [#allocation5]  }
   0x7   :  { %s30_s23 = sshll.u32 %s202_s22, 4  ;;  %s31_s23 = int_to_ptr.vmem [resolvable:$true] %s30_s23 }
   0x8   :  { %36 = dma.hbm_to_vmem [thread:$0]  %s29_s19, 512, %s31_s23, [#allocation6], %s200_s20, %s200_s20, %s201_s21  }
   0x9   :  { %193 = dma.done.wait [#allocation3], 256  }
   0xa   :  { %194 = vsyncadd [#allocation3], 4294967040 }
   0xb   :  { %195 = dma.done.wait [#allocation6], 512  }
   0xc   :  { %196 = vsyncadd [#allocation6], 4294966784  ;;  %v52_v0 = vld [vmem:[#allocation5 + $0x18] sm:$0xff]  ;;  %v51_v1 = vld [vmem:[#allocation5 + $0x10] sm:$0xff]  ;;  %vm57_vm0 = vcmask 261120   ;;  %s203_s24 = smov [#allocation7]  }
   0xd   :  { %76 = vmatpush.msra.mxu0 %v52_v0  ;;  %111 = vmatpush.msra.mxu1 %v52_v0  ;;  %v50_v2 = vld [vmem:[#allocation5 + $0x8] sm:$0xff]  ;;  %v49_v3 = vld [vmem:[#allocation5] sm:$0xff]  ;;  %v47_v4 = vld [vmem:[#allocation2] sm:$0xff]  ;;  %s93_s25 = sshll.u32 %s203_s24, 4  ;;  %s95_s28 = sshll.u32 %s248_s3, 4  ;;  %s94_s25 = int_to_ptr.vmem [resolvable:$true] %s93_s25  ;;  %s96_s28 = int_to_ptr.hbm [resolvable:$true] %s95_s28 }
   0xe   :  { %v48_v5 = vld [vmem:[#allocation2 + $0x8] sm:$0xff]  ;;  %v120_v6 = vld [vmem:[%s247_s2] ss:$0 sm:$0xff] }
   0xf   :  { %77 = vmatpush.msra.mxu0 %v51_v1  ;;  %112 = vmatpush.msra.mxu1 %v51_v1 }
  0x11   :  { %78 = vmatpush.msra.mxu0 %v50_v2  ;;  %113 = vmatpush.msra.mxu1 %v50_v2 }
  0x13   :  { %79 = vmatpush.msra.mxu0 %v49_v3  ;;  %114 = vmatpush.msra.mxu1 %v49_v3 }
  0x14   :  { %109 = vmatmul.msk.f32.vlgmr.msra.gmra.mxu0 %vm57_vm0, %v47_v4  ;;  %110 = vmatmul.msk.f32.vlgmr.msra.gmra.mxu1 %vm57_vm0, %v48_v5 }
  0x91   :  { %v81_v7 = vpop.f32.mrf.mxu0  ;;  %v84_v8 = vpop.f32.mrf.mxu1 }
  0x92   :  { %v82_v9 = vadd.f32 %v120_v6, %v81_v7  ;;  %v85_v10 = vadd.f32 %v120_v6, %v84_v8 }
  0x94   :  { %87 = vst [vmem:[#allocation7] sm:$0xff] %v82_v9 }
  0x95   :  { %88 = vst [vmem:[#allocation7 + $0x8] sm:$0xff] %v85_v10 }
  0x96   :  { %101 = dma.vmem_to_hbm [thread:$0]  %s94_s25, 256, %s96_s28, [#allocation4], %s200_s20, %s200_s20, %s201_s21  }
  0x97   :  { %197 = dma.done.wait [#allocation4], 256  }
  0x98   :  { %198 = vsyncadd [#allocation4], 4294967040 }
  0x99   :  { %106 = vsyncpa [#allocation3], 1 }
  0x9a   :  { %107 = vsyncpa [#allocation6], 1 }
  0x9b   :  { %108 = vsyncpa [#allocation4], 1 }

</bundles_post_ra>
